<compile_context>
chip_gen: v5e
topology: v5e:2x2
jax: 0.10.0
libtpu: 0.0.40
codegen_flags: <defaults>
</compile_context>

<pallas_src>
import jax
import jax.numpy as jnp
from jax.experimental import pallas as pl
from jax.experimental.pallas import tpu as pltpu

F_PAD = 128                      # padded feature width: one vreg lane span (lane-dense)
VMEM_LIMIT = 48 * 1024 * 1024    # <= v7x 64 MiB physical; plenty on v5e/v6e (128 MiB)


def _round_up(v, m):
    return ((v + m - 1) // m) * m


def _pick_tile(n, candidates, min_blocks=1):
    for c in candidates:
        if n % c == 0 and n // c >= min_blocks:
            return c
    return n


def _coo_to_padded_bf16(values, rows, cols, n_pad):
    # Single scatter at padded size (f32 for exact duplicate-sum), single cast.
    dense = jnp.zeros((n_pad, n_pad), jnp.float32).at[rows, cols].add(values)
    return dense.astype(jnp.bfloat16)


# ---------------------------------------------------------------------------
# Fused small-N kernel: both MLPs + both spmm's in one pass (everything VMEM-resident).
#   a1 = relu(x @ Wa + ba),  Wa = [w1 | w3]          (F_PAD, 2*F_PAD)   bf16
#   a2 = relu(a1 @ Wb + bb), Wb = blkdiag(w2, w4)    (2*F_PAD, 2*F_PAD) bf16
#   h  = a2[:, :F_PAD] (bf16),  s = a2[:, F_PAD:] (f32)
#   Wx = K @ h (f32 acc, stays in VMEM);  out = A @ Wx + s  (f32)
# ---------------------------------------------------------------------------
def fused_kernel(x_ref, wa_ref, ba_ref, wb_ref, bb_ref, k_ref, a_ref, out_ref):
    x = x_ref[...].astype(jnp.bfloat16)
    a1 = jnp.maximum(
        jnp.dot(x, wa_ref[...], preferred_element_type=jnp.float32) + ba_ref[...], 0.0)
    a2 = jnp.maximum(
        jnp.dot(a1.astype(jnp.bfloat16), wb_ref[...],
                preferred_element_type=jnp.float32) + bb_ref[...], 0.0)
    h = a2[:, :F_PAD].astype(jnp.bfloat16)
    s = a2[:, F_PAD:]
    wx = jnp.dot(k_ref[...], h, preferred_element_type=jnp.float32)        # f32, VMEM only
    x2 = jnp.dot(a_ref[...].astype(jnp.float32), wx,
                 preferred_element_type=jnp.float32) + s
    out_ref[...] = x2


# ---------------------------------------------------------------------------
# Large-N path, kernel 1: fused node MLPs, row-tiled (parallel axis feeds both TCs).
# ---------------------------------------------------------------------------
def mlp_kernel(x_ref, wa_ref, ba_ref, wb_ref, bb_ref, h_ref, s_ref):
    x = x_ref[...].astype(jnp.bfloat16)
    a1 = jnp.maximum(
        jnp.dot(x, wa_ref[...], preferred_element_type=jnp.float32) + ba_ref[...], 0.0)
    a2 = jnp.maximum(
        jnp.dot(a1.astype(jnp.bfloat16), wb_ref[...],
                preferred_element_type=jnp.float32) + bb_ref[...], 0.0)
    h_ref[...] = a2[:, :F_PAD].astype(h_ref.dtype)    # bf16 -> feeds first spmm
    s_ref[...] = a2[:, F_PAD:].astype(s_ref.dtype)    # f32  -> residual of second spmm


# ---------------------------------------------------------------------------
# Large-N path, kernel 2: block-sparse tiled "spmm"  out = M @ V (+ residual).
# Grid = (row tiles 'parallel', occupied-k-blocks 'arbitrary').  The occupied
# k-block ids per row tile come in via scalar prefetch; padded grid steps reuse
# the previous block index (no extra DMA) and are masked out of the accumulate.
# RHS (n_pad x 128) is whole-array resident when it fits the VMEM budget.
# ---------------------------------------------------------------------------
def _block_sparse_matmul(mat_bf16, rows, cols, rhs, residual, tm, tk):
    n_pad = mat_bf16.shape[0]
    nI, nK = n_pad // tm, n_pad // tk
    with_res = residual is not None

    # Block occupancy -> per-row-tile compressed list of occupied k blocks.
    bi = rows // tm
    bk = cols // tk
    occ = (jnp.zeros((nI, nK), jnp.int32).at[bi, bk].add(1) > 0).astype(jnp.int32)
    counts = occ.sum(axis=1).astype(jnp.int32)
    order = jnp.argsort(1 - occ, axis=1, stable=True).astype(jnp.int32)   # occupied first
    max_blk = max(int(counts.max()), 1)                                   # static grid extent
    j_idx = jnp.arange(max_blk, dtype=jnp.int32)[None, :]
    last = jnp.take_along_axis(order, jnp.maximum(counts - 1, 0)[:, None], axis=1)
    kblk = jnp.where(j_idx < counts[:, None], order[:, :max_blk], last).astype(jnp.int32)

    resident = (n_pad * F_PAD * rhs.dtype.itemsize * 2) <= (12 * 1024 * 1024)

    def kernel(kblk_ref, cnt_ref, *refs):
        if with_res:
            m_ref, v_ref, r_ref, out_ref, acc_ref = refs
        else:
            m_ref, v_ref, out_ref, acc_ref = refs
        i = pl.program_id(0)
        j = pl.program_id(1)

        @pl.when(j == 0)
        def _():
            if with_res:
                acc_ref[...] = r_ref[...]            # residual seeds the accumulator
            else:
                acc_ref[...] = jnp.zeros_like(acc_ref)

        @pl.when(j < cnt_ref[i])
        def _():
            if resident:
                start = pl.multiple_of(kblk_ref[i, j] * tk, tk)
                v = v_ref[pl.ds(start, tk), :]
            else:
                v = v_ref[...]
            m = m_ref[...]
            if m.dtype != v.dtype:
                m = m.astype(v.dtype)                # bf16 M x f32 Wx -> f32 MXU pass
            acc_ref[...] += jnp.dot(m, v, preferred_element_type=jnp.float32)

        @pl.when(j == pl.num_programs(1) - 1)
        def _():
            out_ref[...] = acc_ref[...].astype(out_ref.dtype)

    m_spec = pl.BlockSpec((tm, tk), lambda i, j, kb, cn: (i, kb[i, j]))
    if resident:
        v_spec = pl.BlockSpec((n_pad, F_PAD), lambda i, j, kb, cn: (0, 0))
    else:
        v_spec = pl.BlockSpec((tk, F_PAD), lambda i, j, kb, cn: (kb[i, j], 0))
    io_spec = pl.BlockSpec((tm, F_PAD), lambda i, j, kb, cn: (i, 0))
    in_specs = [m_spec, v_spec] + ([io_spec] if with_res else [])
    operands = (kblk, counts, mat_bf16, rhs) + ((residual,) if with_res else ())

    return pl.pallas_call(
        kernel,
        grid_spec=pltpu.PrefetchScalarGridSpec(
            num_scalar_prefetch=2,
            grid=(nI, max_blk),
            in_specs=in_specs,
            out_specs=io_spec,
            scratch_shapes=[pltpu.VMEM((tm, F_PAD), jnp.float32)],
        ),
        out_shape=jax.ShapeDtypeStruct((n_pad, F_PAD), jnp.float32),
        compiler_params=pltpu.CompilerParams(
            dimension_semantics=("parallel", "arbitrary"),
            vmem_limit_bytes=VMEM_LIMIT),
    )(*operands)


# ---------------------------------------------------------------------------
# Wrapper reproducing SPGNNLayer.forward (sk_channel=0 path).
# ---------------------------------------------------------------------------
def spgnn_layer_forward(K_value, K_index, A_value, A_index, x, params, n1, n2):
    N = n1 * n2
    assert x.shape[0] == 1 and x.shape[1] == N
    Fin = x.shape[2]
    Fout = params["w2"].shape[1]
    assert Fin <= F_PAD and Fout <= F_PAD

    fused = N <= 1024
    n_pad = _round_up(N, 128) if fused else _round_up(N, 512)

    # Padded bf16 operators: one scatter + one cast each.  Padded rows/cols are
    # exactly zero, which neutralizes the (bias-induced) MLP outputs on padded nodes.
    K_bf16 = _coo_to_padded_bf16(K_value, K_index[0], K_index[1], n_pad)
    A_bf16 = _coo_to_padded_bf16(A_value, A_index[0], A_index[1], n_pad)
    x_pad = jnp.zeros((n_pad, F_PAD), jnp.float32).at[:N, :Fin].set(x[0])

    # Fused / padded MLP weights (bf16 operands for the MXU; biases stay f32).
    Wa = (jnp.zeros((F_PAD, 2 * F_PAD), jnp.float32)
          .at[:Fin, :Fout].set(params["w1"])
          .at[:Fin, F_PAD:F_PAD + Fout].set(params["w3"])).astype(jnp.bfloat16)
    ba = (jnp.zeros((1, 2 * F_PAD), jnp.float32)
          .at[:, :Fout].set(params["b1"])
          .at[:, F_PAD:F_PAD + Fout].set(params["b3"]))
    Wb = (jnp.zeros((2 * F_PAD, 2 * F_PAD), jnp.float32)
          .at[:Fout, :Fout].set(params["w2"])
          .at[F_PAD:F_PAD + Fout, F_PAD:F_PAD + Fout].set(params["w4"])).astype(jnp.bfloat16)
    bb = (jnp.zeros((1, 2 * F_PAD), jnp.float32)
          .at[:, :Fout].set(params["b2"])
          .at[:, F_PAD:F_PAD + Fout].set(params["b4"]))

    if fused:
        # Small-N fast path: single kernel, single grid step, everything in VMEM.
        # (Single-TC on v7x, but at this size launch overhead dominates anyway.)
        x2_pad = pl.pallas_call(
            fused_kernel,
            grid=(1,),
            in_specs=[
                pl.BlockSpec((n_pad, F_PAD), lambda i: (0, 0)),
                pl.BlockSpec((F_PAD, 2 * F_PAD), lambda i: (0, 0)),
                pl.BlockSpec((1, 2 * F_PAD), lambda i: (0, 0)),
                pl.BlockSpec((2 * F_PAD, 2 * F_PAD), lambda i: (0, 0)),
                pl.BlockSpec((1, 2 * F_PAD), lambda i: (0, 0)),
                pl.BlockSpec((n_pad, n_pad), lambda i: (0, 0)),
                pl.BlockSpec((n_pad, n_pad), lambda i: (0, 0)),
            ],
            out_specs=pl.BlockSpec((n_pad, F_PAD), lambda i: (0, 0)),
            out_shape=jax.ShapeDtypeStruct((n_pad, F_PAD), jnp.float32),
            compiler_params=pltpu.CompilerParams(
                dimension_semantics=("arbitrary",),
                vmem_limit_bytes=VMEM_LIMIT),
        )(x_pad, Wa, ba, Wb, bb, K_bf16, A_bf16)
    else:
        # >= 2 row tiles on the 'parallel' axis (feeds both v7x TensorCores).
        tm = _pick_tile(n_pad, (1024, 512, 256, 128), min_blocks=2)
        tk = _pick_tile(n_pad, (1024, 512, 256, 128), min_blocks=1)

        h_bf16, s_f32 = pl.pallas_call(
            mlp_kernel,
            grid=(n_pad // tm,),
            in_specs=[pl.BlockSpec((tm, F_PAD), lambda i: (i, 0)),
                      pl.BlockSpec((F_PAD, 2 * F_PAD), lambda i: (0, 0)),
                      pl.BlockSpec((1, 2 * F_PAD), lambda i: (0, 0)),
                      pl.BlockSpec((2 * F_PAD, 2 * F_PAD), lambda i: (0, 0)),
                      pl.BlockSpec((1, 2 * F_PAD), lambda i: (0, 0))],
            out_specs=[pl.BlockSpec((tm, F_PAD), lambda i: (i, 0)),
                       pl.BlockSpec((tm, F_PAD), lambda i: (i, 0))],
            out_shape=(jax.ShapeDtypeStruct((n_pad, F_PAD), jnp.bfloat16),
                       jax.ShapeDtypeStruct((n_pad, F_PAD), jnp.float32)),
            compiler_params=pltpu.CompilerParams(
                dimension_semantics=("parallel",),
                vmem_limit_bytes=VMEM_LIMIT),
        )(x_pad, Wa, ba, Wb, bb)

        # Wx = K @ h (kept in f32);  x2 = A @ Wx + s.
        wx_f32 = _block_sparse_matmul(K_bf16, K_index[0], K_index[1], h_bf16, None, tm, tk)
        x2_pad = _block_sparse_matmul(A_bf16, A_index[0], A_index[1], wx_f32, s_f32, tm, tk)

    return x2_pad[:N, :Fout][None]  # (1, N, out_nfeat)


# ---------------------------------------------------------------------------
# Pure-JAX references.
# ---------------------------------------------------------------------------
def spgnn_layer_reference(K_value, K_index, A_value, A_index, x, params, n1, n2,
                          match_kernel=False):
    """match_kernel=True mirrors the kernel's bf16 operand casts (tight check)."""
    N = n1 * n2
    K_dense = jnp.zeros((N, N), jnp.float32).at[K_index[0], K_index[1]].add(K_value)
    A_dense = jnp.zeros((N, N), jnp.float32).at[A_index[0], A_index[1]].add(A_value)
    p = params

    def mlp_f32(v, wa, ba_, wb, bb_):
        v = jnp.maximum(v @ wa + ba_, 0.0)
        return jnp.maximum(v @ wb + bb_, 0.0)

    def mlp_bf16(v, wa, ba_, wb, bb_):
        a1 = jnp.maximum(jnp.dot(v.astype(jnp.bfloat16), wa.astype(jnp.bfloat16),
                                 preferred_element_type=jnp.float32) + ba_, 0.0)
        return jnp.maximum(jnp.dot(a1.astype(jnp.bfloat16), wb.astype(jnp.bfloat16),
                                   preferred_element_type=jnp.float32) + bb_, 0.0)

    if match_kernel:
        h = mlp_bf16(x[0], p["w1"], p["b1"], p["w2"], p["b2"])
        s = mlp_bf16(x[0], p["w3"], p["b3"], p["w4"], p["b4"])
        Wx = jnp.dot(K_dense.astype(jnp.bfloat16), h.astype(jnp.bfloat16),
                     preferred_element_type=jnp.float32)
        x2 = jnp.dot(A_dense.astype(jnp.bfloat16).astype(jnp.float32), Wx,
                     preferred_element_type=jnp.float32) + s
    else:
        h = mlp_f32(x[0], p["w1"], p["b1"], p["w2"], p["b2"])
        s = mlp_f32(x[0], p["w3"], p["b3"], p["w4"], p["b4"])
        x2 = A_dense @ (K_dense @ h) + s
    return x2[None]


if __name__ == "__main__":
    key = jax.random.PRNGKey(0)
    keys = jax.random.split(key, 13)

    b, n1, n2 = 1, 8, 8
    N = n1 * n2                      # 64 nodes -> fused small-N path
    in_nfeat = 16
    out_nfeat = 32

    x = jax.random.normal(keys[0], (b, N, in_nfeat), dtype=jnp.float32)
    nnz_k, nnz_a = 256, 128
    K_index = jax.random.randint(keys[1], (2, nnz_k), 0, N)
    K_value = jax.random.normal(keys[2], (nnz_k,), dtype=jnp.float32)
    A_index = jax.random.randint(keys[3], (2, nnz_a), 0, N)
    A_value = jax.random.uniform(keys[4], (nnz_a,), dtype=jnp.float32)

    def linear_init(kw, kb, fan_in, fan_out):
        bound = 1.0 / (fan_in ** 0.5)
        W = jax.random.uniform(kw, (fan_in, fan_out), jnp.float32, -bound, bound)
        bb_ = jax.random.uniform(kb, (1, fan_out), jnp.float32, -bound, bound)
        return W, bb_

    w1, b1 = linear_init(keys[5], keys[6], in_nfeat, out_nfeat)     # n_func[0]
    w2, b2 = linear_init(keys[7], keys[8], out_nfeat, out_nfeat)    # n_func[2]
    w3, b3 = linear_init(keys[9], keys[10], in_nfeat, out_nfeat)    # n_self_func[0]
    w4, b4 = linear_init(keys[11], keys[12], out_nfeat, out_nfeat)  # n_self_func[2]
    params = dict(w1=w1, b1=b1, w2=w2, b2=b2, w3=w3, b3=b3, w4=w4, b4=b4)

    # --- Case 1: small graph (fused path) ---------------------------------
    out = spgnn_layer_forward(K_value, K_index, A_value, A_index, x, params, n1, n2)
    out = jax.block_until_ready(out)
    assert out.shape == (b, N, out_nfeat), out.shape
    ref_m = spgnn_layer_reference(K_value, K_index, A_value, A_index, x, params,
                                  n1, n2, match_kernel=True)
    assert jnp.allclose(out, ref_m, atol=2e-2, rtol=2e-2), "case1: mismatch vs bf16-matched ref"
    ref_f = spgnn_layer_reference(K_value, K_index, A_value, A_index, x, params,
                                  n1, n2, match_kernel=False)
    assert jnp.allclose(out, ref_f, atol=1e-1, rtol=1e-1), "case1: mismatch vs f32 ref"

    # --- Case 2: larger graph (block-sparse tiled path) -------------------
    n1b = n2b = 36
    Nb = n1b * n2b                   # 1296 -> n_pad 1536, 3x3 blocks of 512
    kk = jax.random.split(jax.random.PRNGKey(1), 6)
    xb = jax.random.normal(kk[0], (1, Nb, in_nfeat), dtype=jnp.float32)
    nnz_kb, nnz_ab = 8192, 4096
    Kb_index = jax.random.randint(kk[1], (2, nnz_kb), 0, Nb)
    Kb_value = jax.random.normal(kk[2], (nnz_kb,), dtype=jnp.float32)
    # A only touches the first half of the rows -> some row tiles have zero
    # occupied k-blocks (exercises masked / padded grid steps of the sparse path).
    Ab_rows = jax.random.randint(kk[3], (nnz_ab,), 0, Nb // 2)
    Ab_cols = jax.random.randint(kk[4], (nnz_ab,), 0, Nb)
    Ab_index = jnp.stack([Ab_rows, Ab_cols])
    Ab_value = jax.random.uniform(kk[5], (nnz_ab,), dtype=jnp.float32)

    outb = spgnn_layer_forward(Kb_value, Kb_index, Ab_value, Ab_index, xb, params, n1b, n2b)
    outb = jax.block_until_ready(outb)
    assert outb.shape == (1, Nb, out_nfeat), outb.shape
    refb_m = spgnn_layer_reference(Kb_value, Kb_index, Ab_value, Ab_index, xb, params,
                                   n1b, n2b, match_kernel=True)
    assert jnp.allclose(outb, refb_m, atol=3e-2, rtol=3e-2), "case2: mismatch vs bf16-matched ref"
    refb_f = spgnn_layer_reference(Kb_value, Kb_index, Ab_value, Ab_index, xb, params,
                                   n1b, n2b, match_kernel=False)
    assert jnp.allclose(outb, refb_f, atol=2e-1, rtol=2e-1), "case2: mismatch vs f32 ref"

    print("KERNEL_OK")
</pallas_src>

<mosaic_0001>
module attributes {stable_mosaic.version = 11 : i64} {
  func.func @fused_kernel(%arg0: i32, %arg1: memref<128x128xf32, #tpu.memory_space<vmem>>, %arg2: memref<128x256xbf16, #tpu.memory_space<vmem>>, %arg3: memref<1x256xf32, #tpu.memory_space<vmem>>, %arg4: memref<256x256xbf16, #tpu.memory_space<vmem>>, %arg5: memref<1x256xf32, #tpu.memory_space<vmem>>, %arg6: memref<128x128xbf16, #tpu.memory_space<vmem>>, %arg7: memref<128x128xbf16, #tpu.memory_space<vmem>>, %arg8: memref<128x128xf32, #tpu.memory_space<vmem>>) attributes {dimension_semantics = [#tpu.dimension_semantics<arbitrary>], iteration_bounds = array<i64: 1>, scalar_prefetch = 0 : i64, scratch_operands = 0 : i64, tpu.core_type = #tpu.core_type<tc>, window_params = [{pipeline_mode = #tpu.pipeline_mode<synchronous>, transform_indices = @transform_0, window_bounds = array<i64: 128, 128>}, {pipeline_mode = #tpu.pipeline_mode<synchronous>, transform_indices = @transform_1, window_bounds = array<i64: 128, 256>}, {pipeline_mode = #tpu.pipeline_mode<synchronous>, transform_indices = @transform_2, window_bounds = array<i64: 1, 256>}, {pipeline_mode = #tpu.pipeline_mode<synchronous>, transform_indices = @transform_3, window_bounds = array<i64: 256, 256>}, {pipeline_mode = #tpu.pipeline_mode<synchronous>, transform_indices = @transform_4, window_bounds = array<i64: 1, 256>}, {pipeline_mode = #tpu.pipeline_mode<synchronous>, transform_indices = @transform_5, window_bounds = array<i64: 128, 128>}, {pipeline_mode = #tpu.pipeline_mode<synchronous>, transform_indices = @transform_6, window_bounds = array<i64: 128, 128>}, {pipeline_mode = #tpu.pipeline_mode<synchronous>, transform_indices = @transform_7, window_bounds = array<i64: 128, 128>}]} {
    %c0 = arith.constant 0 : index
    %c0_0 = arith.constant 0 : index
    %0 = vector.load %arg1[%c0, %c0_0] : memref<128x128xf32, #tpu.memory_space<vmem>>, vector<128x128xf32>
    %1 = arith.truncf %0 : vector<128x128xf32> to vector<128x128xbf16>
    %c0_1 = arith.constant 0 : index
    %c0_2 = arith.constant 0 : index
    %2 = vector.load %arg2[%c0_1, %c0_2] : memref<128x256xbf16, #tpu.memory_space<vmem>>, vector<128x256xbf16>
    %cst = arith.constant dense<0.000000e+00> : vector<128x256xf32>
    %3 = tpu.matmul %1, %2, %cst {dimension_numbers = #tpu.dot_dimension_numbers<[1], [0], [0], [1], [0, 0, 1, 1], [], []>} : vector<128x128xbf16>, vector<128x256xbf16>, vector<128x256xf32> -> vector<128x256xf32>
    %c0_3 = arith.constant 0 : index
    %c0_4 = arith.constant 0 : index
    %4 = vector.load %arg3[%c0_3, %c0_4] : memref<1x256xf32, #tpu.memory_space<vmem>>, vector<1x256xf32>
    %5 = vector.broadcast %4 : vector<1x256xf32> to vector<128x256xf32>
    %6 = arith.addf %3, %5 : vector<128x256xf32>
    %cst_5 = arith.constant 0.000000e+00 : f32
    %7 = vector.broadcast %cst_5 : f32 to vector<128x256xf32>
    %8 = arith.maximumf %6, %7 : vector<128x256xf32>
    %9 = arith.truncf %8 : vector<128x256xf32> to vector<128x256xbf16>
    %c0_6 = arith.constant 0 : index
    %c0_7 = arith.constant 0 : index
    %10 = vector.load %arg4[%c0_6, %c0_7] : memref<256x256xbf16, #tpu.memory_space<vmem>>, vector<256x256xbf16>
    %cst_8 = arith.constant dense<0.000000e+00> : vector<128x256xf32>
    %11 = tpu.matmul %9, %10, %cst_8 {dimension_numbers = #tpu.dot_dimension_numbers<[1], [0], [0], [1], [0, 0, 1, 1], [], []>} : vector<128x256xbf16>, vector<256x256xbf16>, vector<128x256xf32> -> vector<128x256xf32>
    %c0_9 = arith.constant 0 : index
    %c0_10 = arith.constant 0 : index
    %12 = vector.load %arg5[%c0_9, %c0_10] : memref<1x256xf32, #tpu.memory_space<vmem>>, vector<1x256xf32>
    %13 = vector.broadcast %12 : vector<1x256xf32> to vector<128x256xf32>
    %14 = arith.addf %11, %13 : vector<128x256xf32>
    %cst_11 = arith.constant 0.000000e+00 : f32
    %15 = vector.broadcast %cst_11 : f32 to vector<128x256xf32>
    %16 = arith.maximumf %14, %15 : vector<128x256xf32>
    %17 = vector.extract_strided_slice %16 {offsets = [0, 0], sizes = [128, 128], strides = [1, 1]} : vector<128x256xf32> to vector<128x128xf32>
    %18 = arith.truncf %17 : vector<128x128xf32> to vector<128x128xbf16>
    %19 = vector.extract_strided_slice %16 {offsets = [0, 128], sizes = [128, 128], strides = [1, 1]} : vector<128x256xf32> to vector<128x128xf32>
    %c0_12 = arith.constant 0 : index
    %c0_13 = arith.constant 0 : index
    %20 = vector.load %arg6[%c0_12, %c0_13] : memref<128x128xbf16, #tpu.memory_space<vmem>>, vector<128x128xbf16>
    %cst_14 = arith.constant dense<0.000000e+00> : vector<128x128xf32>
    %21 = tpu.matmul %20, %18, %cst_14 {dimension_numbers = #tpu.dot_dimension_numbers<[1], [0], [0], [1], [0, 0, 1, 1], [], []>} : vector<128x128xbf16>, vector<128x128xbf16>, vector<128x128xf32> -> vector<128x128xf32>
    %c0_15 = arith.constant 0 : index
    %c0_16 = arith.constant 0 : index
    %22 = vector.load %arg7[%c0_15, %c0_16] : memref<128x128xbf16, #tpu.memory_space<vmem>>, vector<128x128xbf16>
    %23 = arith.extf %22 : vector<128x128xbf16> to vector<128x128xf32>
    %cst_17 = arith.constant dense<0.000000e+00> : vector<128x128xf32>
    %24 = tpu.matmul %23, %21, %cst_17 {dimension_numbers = #tpu.dot_dimension_numbers<[1], [0], [0], [1], [0, 0, 1, 1], [], []>} : vector<128x128xf32>, vector<128x128xf32>, vector<128x128xf32> -> vector<128x128xf32>
    %25 = arith.addf %24, %19 : vector<128x128xf32>
    %c0_18 = arith.constant 0 : index
    %c0_19 = arith.constant 0 : index
    %26 = vector.load %arg8[%c0_18, %c0_19] : memref<128x128xf32, #tpu.memory_space<vmem>>, vector<128x128xf32>
    tpu.vector_store %arg8[%c0_18, %c0_19], %25 {strides = array<i32>} : memref<128x128xf32, #tpu.memory_space<vmem>>, vector<128x128xf32>,
    return
  }
  func.func @transform_0(%arg0: i32) -> (i32, i32) {
    %c0_i32 = arith.constant 0 : i32
    %c0_i32_0 = arith.constant 0 : i32
    %c0_i32_1 = arith.constant 0 : i32
    return %c0_i32, %c0_i32_0 : i32, i32
  }
  func.func @transform_1(%arg0: i32) -> (i32, i32) {
    %c0_i32 = arith.constant 0 : i32
    %c0_i32_0 = arith.constant 0 : i32
    %c0_i32_1 = arith.constant 0 : i32
    return %c0_i32, %c0_i32_0 : i32, i32
  }
  func.func @transform_2(%arg0: i32) -> (i32, i32) {
    %c0_i32 = arith.constant 0 : i32
    %c0_i32_0 = arith.constant 0 : i32
    %c0_i32_1 = arith.constant 0 : i32
    return %c0_i32, %c0_i32_0 : i32, i32
  }
  func.func @transform_3(%arg0: i32) -> (i32, i32) {
    %c0_i32 = arith.constant 0 : i32
    %c0_i32_0 = arith.constant 0 : i32
    %c0_i32_1 = arith.constant 0 : i32
    return %c0_i32, %c0_i32_0 : i32, i32
  }
  func.func @transform_4(%arg0: i32) -> (i32, i32) {
    %c0_i32 = arith.constant 0 : i32
    %c0_i32_0 = arith.constant 0 : i32
    %c0_i32_1 = arith.constant 0 : i32
    return %c0_i32, %c0_i32_0 : i32, i32
  }
  func.func @transform_5(%arg0: i32) -> (i32, i32) {
    %c0_i32 = arith.constant 0 : i32
    %c0_i32_0 = arith.constant 0 : i32
    %c0_i32_1 = arith.constant 0 : i32
    return %c0_i32, %c0_i32_0 : i32, i32
  }
  func.func @transform_6(%arg0: i32) -> (i32, i32) {
    %c0_i32 = arith.constant 0 : i32
    %c0_i32_0 = arith.constant 0 : i32
    %c0_i32_1 = arith.constant 0 : i32
    return %c0_i32, %c0_i32_0 : i32, i32
  }
  func.func @transform_7(%arg0: i32) -> (i32, i32) {
    %c0_i32 = arith.constant 0 : i32
    %c0_i32_0 = arith.constant 0 : i32
    %c0_i32_1 = arith.constant 0 : i32
    return %c0_i32, %c0_i32_0 : i32, i32
  }
}

</mosaic_0001>

<bundles_post_ra>
// kernel: tpu_custom_call.1
= control target key start
LH: loop header
LB: loop body
LE: loop exit
PB: predicated region body
PF: predicated region fallthrough
CT: control target
= control target key end

     0   :  { %12 = vsyncpa [#allocation3], 0  ;;  %s1771_s0 = inlined_call_operand.hbm [shape: f32[128,128], index: 0, kind: input, shape index: {}]   ;;  %s1772_s1 = inlined_call_operand.hbm [shape: bf16[128,256], index: 1, kind: input, shape index: {}]   ;;  %s1773_s2 = inlined_call_operand.hbm [shape: f32[1,256], index: 2, kind: input, shape index: {}]   ;;  %s1774_s3 = inlined_call_operand.hbm [shape: bf16[256,256], index: 3, kind: input, shape index: {}]   ;;  %s1775_s4 = inlined_call_operand.vmem [shape: f32[1,256], index: 4, kind: input, shape index: {}]   ;;  %s1776_s5 = inlined_call_operand.hbm [shape: bf16[128,128], index: 5, kind: input, shape index: {}]   ;;  %s1777_s6 = inlined_call_operand.hbm [shape: bf16[128,128], index: 6, kind: input, shape index: {}]   ;;  %s1778_s7 = inlined_call_operand.hbm [shape: f32[128,128], index: 7, kind: output, shape index: {}]  }
   0x1   :  { %13 = vsyncpa [#allocation6], 0 }
   0x2   :  { %14 = vsyncpa [#allocation9], 0 }
   0x3   :  { %15 = vsyncpa [#allocation12], 0 }
   0x4   :  { %16 = vsyncpa [#allocation4], 0  ;;  %s34_s26 = sshll.u32 %s1772_s1, 4  ;;  %s1581_s27 = smov [#allocation5]   ;;  %s35_s26 = int_to_ptr.hbm [resolvable:$true] %s34_s26 }
   0x5   :  { %s36_s28 = sshll.u32 %s1581_s27, 4  ;;  %s58_s8 = sshll.u32 %s1774_s3, 4  ;;  %s37_s28 = int_to_ptr.vmem [resolvable:$true] %s36_s28  ;;  %s59_s8 = int_to_ptr.hbm [resolvable:$true] %s58_s8 }
   0x6   :  { %s1582_s9 = smov 128   ;;  %s1583_s10 = smov 8  }
   0x7   :  { %42 = dma.hbm_to_vmem [thread:$0]  %s35_s26, 2048, %s37_s28, [#allocation6], %s1582_s9, %s1582_s9, %s1583_s10  }
   0x8   :  { %s1584_s11 = smov [#allocation8]   ;;  %s21_s1 = sshll.u32 %s1771_s0, 4  ;;  %s22_s1 = int_to_ptr.hbm [resolvable:$true] %s21_s1 }
   0x9   :  { %s60_s12 = sshll.u32 %s1584_s11, 4  ;;  %s48_s16 = sshll.u32 %s1773_s2, 4  ;;  %s61_s12 = int_to_ptr.vmem [resolvable:$true] %s60_s12  ;;  %s49_s16 = int_to_ptr.hbm [resolvable:$true] %s48_s16 }
   0xa   :  { %66 = dma.hbm_to_vmem [thread:$0]  %s59_s8, 4096, %s61_s12, [#allocation9], %s1582_s9, %s1582_s9, %s1583_s10  }
   0xb   :  { %s1585_s17 = smov [#allocation2]   ;;  %s1586_s19 = smov [#allocation7]  }
   0xc   :  { %s23_s18 = sshll.u32 %s1585_s17, 4  ;;  %s50_s0 = sshll.u32 %s1586_s19, 4  ;;  %s24_s18 = int_to_ptr.vmem [resolvable:$true] %s23_s18  ;;  %s51_s0 = int_to_ptr.vmem [resolvable:$true] %s50_s0 }
   0xd   :  { %29 = dma.hbm_to_vmem [thread:$0]  %s22_s1, 2048, %s24_s18, [#allocation3], %s1582_s9, %s1582_s9, %s1583_s10  }
   0xe   :  { %s73_s22 = sshll.u32 %s1776_s5, 4  ;;  %s1587_s23 = smov [#allocation10]   ;;  %s74_s22 = int_to_ptr.hbm [resolvable:$true] %s73_s22 }
   0xf   :  { %53 = dma.hbm_to_vmem [thread:$0]  %s49_s16, 32, %s51_s0, [#allocation6]  }
  0x10   :  { %s75_s24 = sshll.u32 %s1587_s23, 4  ;;  %s86_s26 = sshll.u32 %s1777_s6, 4  ;;  %s76_s24 = int_to_ptr.vmem [resolvable:$true] %s75_s24  ;;  %s87_s26 = int_to_ptr.hbm [resolvable:$true] %s86_s26 }
  0x11   :  { %s1588_s27 = smov 64   ;;  %s1589_s28 = smov 4  }
  0x12   :  { %81 = dma.hbm_to_vmem [thread:$0]  %s74_s22, 1024, %s76_s24, [#allocation9], %s1588_s27, %s1588_s27, %s1589_s28  }
  0x13   :  { %s1590_s29 = smov [#allocation11]  }
  0x14   :  { %s88_s30 = sshll.u32 %s1590_s29, 4  ;;  %s89_s30 = int_to_ptr.vmem [resolvable:$true] %s88_s30 }
  0x15   :  { %94 = dma.hbm_to_vmem [thread:$0]  %s87_s26, 1024, %s89_s30, [#allocation12], %s1588_s27, %s1588_s27, %s1589_s28  }
  0x16   :  { %1571 = dma.done.wait [#allocation3], 2048  }
  0x17   :  { %1572 = vsyncadd [#allocation3], 4294965248 }
  0x18   :  { %1573 = dma.done.wait [#allocation6], 2080  }
  0x19   :  { %1574 = vsyncadd [#allocation6], 4294965216 }
  0x1a   :  { %1575 = dma.done.wait [#allocation9], 5120  }
  0x1b   :  { %1576 = vsyncadd [#allocation9], 4294962176 }
  0x1c   :  { %1577 = dma.done.wait [#allocation12], 1024  }
  0x1d   :  { %1578 = vsyncadd [#allocation12], 4294966272  ;;  %v1131_v0 = vld [vmem:[#allocation5 + $0x70] sm:$0xf]  ;;  %v1312_v1 = vld [vmem:[#allocation5 + $0x74] sm:$0xf0] }
  0x1e   :  { %v1311_v2 = vld [vmem:[#allocation5 + $0x74] sm:$0xf]  ;;  %v1132_v3 = vor.u32 %v1312_v1, %v1131_v0  ;;  %v1133_v4 = vld [vmem:[#allocation5 + $0x78] sm:$0xf0]  ;;  %v1123_v5 = vld [vmem:[#allocation5 + $0x60] sm:$0xf] }
  0x1f   :  { %v1310_v6 = vld [vmem:[#allocation5 + $0x64] sm:$0xf0]  ;;  %v1136_v7 = vor.u32 %v1311_v2, %v1133_v4  ;;  %v1309_v8 = vld [vmem:[#allocation5 + $0x64] sm:$0xf]  ;;  %v1125_v9 = vld [vmem:[#allocation5 + $0x68] sm:$0xf0] }
  0x20   :  { %245 = vmatpush.bf16.msra.mxu0 %v1132_v3  ;;  %v1124_v10 = vor.u32 %v1310_v6, %v1123_v5  ;;  %v1128_v11 = vor.u32 %v1309_v8, %v1125_v9  ;;  %v1115_v12 = vld [vmem:[#allocation5 + $0x50] sm:$0xf]  ;;  %v1308_v13 = vld [vmem:[#allocation5 + $0x54] sm:$0xf0]  ;;  %v1307_v14 = vld [vmem:[#allocation5 + $0x54] sm:$0xf] }
  0x21   :  { %294 = vmatpush.bf16.msra.mxu1 %v1136_v7  ;;  %v1117_v15 = vld [vmem:[#allocation5 + $0x58] sm:$0xf0]  ;;  %v1116_v16 = vor.u32 %v1308_v13, %v1115_v12  ;;  %v1107_v18 = vld [vmem:[#allocation5 + $0x40] sm:$0xf]  ;;  %v1306_v19 = vld [vmem:[#allocation5 + $0x44] sm:$0xf0] }
  0x22   :  { %v1120_v17 = vor.u32 %v1307_v14, %v1117_v15  ;;  %v1305_v20 = vld [vmem:[#allocation5 + $0x44] sm:$0xf]  ;;  %v1109_v21 = vld [vmem:[#allocation5 + $0x48] sm:$0xf0]  ;;  %v1108_v22 = vor.u32 %v1306_v19, %v1107_v18  ;;  %v1099_v24 = vld [vmem:[#allocation5 + $0x30] sm:$0xf] }
  0x23   :  { %v1112_v23 = vor.u32 %v1305_v20, %v1109_v21  ;;  %v1304_v25 = vld [vmem:[#allocation5 + $0x34] sm:$0xf0]  ;;  %v1303_v26 = vld [vmem:[#allocation5 + $0x34] sm:$0xf]  ;;  %v1101_v27 = vld [vmem:[#allocation5 + $0x38] sm:$0xf0] }
  0x24   :  { %246 = vmatpush.bf16.msra.mxu0 %v1124_v10  ;;  %v1100_v28 = vor.u32 %v1304_v25, %v1099_v24  ;;  %v1104_v29 = vor.u32 %v1303_v26, %v1101_v27  ;;  %v1091_v30 = vld [vmem:[#allocation5 + $0x20] sm:$0xf]  ;;  %v1302_v31 = vld [vmem:[#allocation5 + $0x24] sm:$0xf0]  ;;  %v1301_v32 = vld [vmem:[#allocation5 + $0x24] sm:$0xf] }
  0x25   :  { %295 = vmatpush.bf16.msra.mxu1 %v1128_v11  ;;  %v1093_v33 = vld [vmem:[#allocation5 + $0x28] sm:$0xf0]  ;;  %v1092_v34 = vor.u32 %v1302_v31, %v1091_v30  ;;  %v1083_v36 = vld [vmem:[#allocation5 + $0x10] sm:$0xf]  ;;  %v1300_v37 = vld [vmem:[#allocation5 + $0x14] sm:$0xf0] }
  0x26   :  { %v1096_v35 = vor.u32 %v1301_v32, %v1093_v33  ;;  %v1299_v38 = vld [vmem:[#allocation5 + $0x14] sm:$0xf]  ;;  %v1085_v39 = vld [vmem:[#allocation5 + $0x18] sm:$0xf0]  ;;  %v1084_v40 = vor.u32 %v1300_v37, %v1083_v36  ;;  %v1075_v42 = vld [vmem:[#allocation5] sm:$0xf] }
  0x27   :  { %v1088_v41 = vor.u32 %v1299_v38, %v1085_v39  ;;  %v1298_v43 = vld [vmem:[#allocation5 + $0x4] sm:$0xf0]  ;;  %v1297_v44 = vld [vmem:[#allocation5 + $0x4] sm:$0xf]  ;;  %v1077_v45 = vld [vmem:[#allocation5 + $0x8] sm:$0xf0] }
  0x28   :  { %247 = vmatpush.bf16.msra.mxu0 %v1116_v16  ;;  %v1076_v46 = vor.u32 %v1298_v43, %v1075_v42  ;;  %v119_v47 = vld [vmem:[#allocation2] sm:$0xff]  ;;  %v120_v48 = vld [vmem:[#allocation2 + $0x8] sm:$0xff]  ;;  %v1080_v49 = vor.u32 %v1297_v44, %v1077_v45  ;;  %v121_v51 = vld [vmem:[#allocation2 + $0x10] sm:$0xff]  ;;  %s1057_s13 = sshll.u32 %s1778_s7, 4  ;;  %s1058_s13 = int_to_ptr.hbm [resolvable:$true] %s1057_s13 }
  0x29   :  { %296 = vmatpush.bf16.msra.mxu1 %v1120_v17  ;;  %v135_v50 = vpack.c.bf16 %v120_v48, %v119_v47  ;;  %v122_v52 = vld [vmem:[#allocation2 + $0x18] sm:$0xff]  ;;  %v123_v54 = vld [vmem:[#allocation2 + $0x20] sm:$0xff]  ;;  %v124_v55 = vld [vmem:[#allocation2 + $0x28] sm:$0xff] }
  0x2a   :  { %v136_v53 = vpack.c.bf16 %v122_v52, %v121_v51  ;;  %v137_v56 = vpack.c.bf16 %v124_v55, %v123_v54  ;;  %v125_v57 = vld [vmem:[#allocation2 + $0x30] sm:$0xff]  ;;  %v126_v58 = vld [vmem:[#allocation2 + $0x38] sm:$0xff]  ;;  %v127_v60 = vld [vmem:[#allocation2 + $0x40] sm:$0xff] }
  0x2b   :  { %v138_v59 = vpack.c.bf16 %v126_v58, %v125_v57  ;;  %v128_v61 = vld [vmem:[#allocation2 + $0x48] sm:$0xff]  ;;  %v1195_v63 = vld [vmem:[#allocation8 + $0x70] sm:$0xf]  ;;  %v1328_v0 = vld [vmem:[#allocation8 + $0x74] sm:$0xf0] }
  0x2c   :  { %248 = vmatpush.bf16.msra.mxu0 %v1108_v22  ;;  %v139_v62 = vpack.c.bf16 %v128_v61, %v127_v60  ;;  %v1259_v1 = vld [vmem:[#allocation8 + $0xf0] sm:$0xf]  ;;  %v1196_v2 = vor.u32 %v1328_v0, %v1195_v63  ;;  %v1344_v3 = vld [vmem:[#allocation8 + $0xf4] sm:$0xf0]  ;;  %v1327_v4 = vld [vmem:[#allocation8 + $0x74] sm:$0xf] }
  0x2d   :  { %297 = vmatpush.bf16.msra.mxu1 %v1112_v23  ;;  %v1197_v5 = vld [vmem:[#allocation8 + $0x78] sm:$0xf0]  ;;  %v1260_v6 = vor.u32 %v1344_v3, %v1259_v1  ;;  %v1343_v8 = vld [vmem:[#allocation8 + $0xf4] sm:$0xf]  ;;  %v1187_v14 = vld [vmem:[#allocation8 + $0x60] sm:$0xf] }
  0x2e   :  { %v1200_v7 = vor.u32 %v1327_v4, %v1197_v5  ;;  %v1261_v9 = vld [vmem:[#allocation8 + $0xf8] sm:$0xf0]  ;;  %589 = vmatpush.bf16.msra.mxu2 %v1196_v2  ;;  %v129_v11 = vld [vmem:[#allocation2 + $0x50] sm:$0xff]  ;;  %v1326_v15 = vld [vmem:[#allocation8 + $0x64] sm:$0xf0] }
  0x2f   :  { %v1264_v10 = vor.u32 %v1343_v8, %v1261_v9  ;;  %638 = vmatpush.bf16.msra.mxu3 %v1260_v6  ;;  %v130_v12 = vld [vmem:[#allocation2 + $0x58] sm:$0xff]  ;;  %v1251_v16 = vld [vmem:[#allocation8 + $0xe0] sm:$0xf]  ;;  %v1188_v17 = vor.u32 %v1326_v15, %v1187_v14  ;;  %v1342_v18 = vld [vmem:[#allocation8 + $0xe4] sm:$0xf0] }
  0x30   :  { %249 = vmatpush.bf16.msra.mxu0 %v1100_v28  ;;  %v140_v13 = vpack.c.bf16 %v130_v12, %v129_v11  ;;  %v1325_v19 = vld [vmem:[#allocation8 + $0x64] sm:$0xf]  ;;  %v1189_v20 = vld [vmem:[#allocation8 + $0x68] sm:$0xf0]  ;;  %v1252_v21 = vor.u32 %v1342_v18, %v1251_v16  ;;  %v1179_v25 = vld [vmem:[#allocation8 + $0x50] sm:$0xf] }
  0x31   :  { %298 = vmatpush.bf16.msra.mxu1 %v1104_v29  ;;  %v1192_v22 = vor.u32 %v1325_v19, %v1189_v20  ;;  %v1341_v23 = vld [vmem:[#allocation8 + $0xe4] sm:$0xf]  ;;  %v1253_v24 = vld [vmem:[#allocation8 + $0xe8] sm:$0xf0]  ;;  %v1324_v27 = vld [vmem:[#allocation8 + $0x54] sm:$0xf0] }
  0x32   :  { %590 = vmatpush.bf16.msra.mxu2 %v1188_v17  ;;  %v1256_v26 = vor.u32 %v1341_v23, %v1253_v24  ;;  %v1243_v28 = vld [vmem:[#allocation8 + $0xd0] sm:$0xf]  ;;  %v1340_v29 = vld [vmem:[#allocation8 + $0xd4] sm:$0xf0]  ;;  %v1180_v30 = vor.u32 %v1324_v27, %v1179_v25  ;;  %v1323_v32 = vld [vmem:[#allocation8 + $0x54] sm:$0xf] }
  0x33   :  { %639 = vmatpush.bf16.msra.mxu3 %v1252_v21  ;;  %v1244_v31 = vor.u32 %v1340_v29, %v1243_v28  ;;  %v1181_v33 = vld [vmem:[#allocation8 + $0x58] sm:$0xf0]  ;;  %v1171_v37 = vld [vmem:[#allocation8 + $0x40] sm:$0xf]  ;;  %v1322_v38 = vld [vmem:[#allocation8 + $0x44] sm:$0xf0] }
  0x34   :  { %250 = vmatpush.bf16.msra.mxu0 %v1092_v34  ;;  %v1339_v34 = vld [vmem:[#allocation8 + $0xd4] sm:$0xf]  ;;  %v1245_v36 = vld [vmem:[#allocation8 + $0xd8] sm:$0xf0]  ;;  %v1321_v42 = vld [vmem:[#allocation8 + $0x44] sm:$0xf]  ;;  %v1172_v43 = vor.u32 %v1322_v38, %v1171_v37 }
  0x35   :  { %299 = vmatpush.bf16.msra.mxu1 %v1096_v35  ;;  %v1184_v35 = vor.u32 %v1323_v32, %v1181_v33  ;;  %v1248_v39 = vor.u32 %v1339_v34, %v1245_v36  ;;  %v1173_v44 = vld [vmem:[#allocation8 + $0x48] sm:$0xf0]  ;;  %v1337_v45 = vld [vmem:[#allocation8 + $0xc4] sm:$0xf]  ;;  %v1163_v52 = vld [vmem:[#allocation8 + $0x30] sm:$0xf] }
  0x36   :  { %591 = vmatpush.bf16.msra.mxu2 %v1180_v30  ;;  %v1176_v48 = vor.u32 %v1321_v42, %v1173_v44  ;;  %v132_v51 = vld [vmem:[#allocation2 + $0x68] sm:$0xff]  ;;  %v1227_v54 = vld [vmem:[#allocation8 + $0xb0] sm:$0xf]  ;;  %v1336_v57 = vld [vmem:[#allocation8 + $0xb4] sm:$0xf0] }
  0x37   :  { %640 = vmatpush.bf16.msra.mxu3 %v1244_v31  ;;  %v1319_v58 = vld [vmem:[#allocation8 + $0x34] sm:$0xf]  ;;  %v1228_v60 = vor.u32 %v1336_v57, %v1227_v54  ;;  %v1229_v63 = vld [vmem:[#allocation8 + $0xb8] sm:$0xf0]  ;;  %v1155_v1 = vld [vmem:[#allocation8 + $0x20] sm:$0xf] }
  0x38   :  { %251 = vmatpush.bf16.msra.mxu0 %v1084_v40  ;;  %v1235_v40 = vld [vmem:[#allocation8 + $0xc0] sm:$0xf]  ;;  %v1318_v2 = vld [vmem:[#allocation8 + $0x24] sm:$0xf0]  ;;  %v1317_v6 = vld [vmem:[#allocation8 + $0x24] sm:$0xf] }
  0x39   :  { %300 = vmatpush.bf16.msra.mxu1 %v1088_v41  ;;  %v1338_v41 = vld [vmem:[#allocation8 + $0xc4] sm:$0xf0]  ;;  %v1156_v3 = vor.u32 %v1318_v2, %v1155_v1  ;;  %v1219_v4 = vld [vmem:[#allocation8 + $0xa0] sm:$0xf]  ;;  %v1157_v8 = vld [vmem:[#allocation8 + $0x28] sm:$0xf0] }
  0x3a   :  { %v1236_v47 = vor.u32 %v1338_v41, %v1235_v40  ;;  %592 = vmatpush.bf16.msra.mxu2 %v1172_v43  ;;  %v1334_v5 = vld [vmem:[#allocation8 + $0xa4] sm:$0xf0]  ;;  %v1333_v9 = vld [vmem:[#allocation8 + $0xa4] sm:$0xf]  ;;  %v1160_v11 = vor.u32 %v1317_v6, %v1157_v8  ;;  %v1316_v14 = vld [vmem:[#allocation8 + $0x14] sm:$0xf0] }
  0x3b   :  { %v1211_v15 = vld [vmem:[#allocation8 + $0x90] sm:$0xf]  ;;  %v1332_v17 = vld [vmem:[#allocation8 + $0x94] sm:$0xf0]  ;;  %v1315_v18 = vld [vmem:[#allocation8 + $0x14] sm:$0xf] }
  0x3c   :  { %252 = vmatpush.bf16.msra.mxu0 %v1076_v46  ;;  %v1237_v46 = vld [vmem:[#allocation8 + $0xc8] sm:$0xf0]  ;;  %641 = vmatpush.bf16.msra.mxu3 %v1236_v47  ;;  %v1149_v19 = vld [vmem:[#allocation8 + $0x18] sm:$0xf0]  ;;  %v1212_v20 = vor.u32 %v1332_v17, %v1211_v15  ;;  %v1314_v27 = vld [vmem:[#allocation8 + $0x4] sm:$0xf0] }
  0x3d   :  { %301 = vmatpush.bf16.msra.mxu1 %v1080_v49  ;;  %v1240_v49 = vor.u32 %v1337_v45, %v1237_v46  ;;  %v1152_v21 = vor.u32 %v1315_v18, %v1149_v19  ;;  %v1213_v23 = vld [vmem:[#allocation8 + $0x98] sm:$0xf0]  ;;  %v133_v25 = vld [vmem:[#allocation2 + $0x70] sm:$0xff]  ;;  %v1203_v28 = vld [vmem:[#allocation8 + $0x80] sm:$0xf] }
  0x3e   :  { %v1330_v30 = vld [vmem:[#allocation8 + $0x84] sm:$0xf0]  ;;  %v1313_v31 = vld [vmem:[#allocation8 + $0x4] sm:$0xf]  ;;  %v1141_v32 = vld [vmem:[#allocation8 + $0x8] sm:$0xf0] }
  0x3f   :  { %253 = vmatmul.bf16.vlgmr.msra.gmra.mxu0 %v135_v50  ;;  %v134_v33 = vld [vmem:[#allocation2 + $0x78] sm:$0xff]  ;;  %v1204_v34 = vor.u32 %v1330_v30, %v1203_v28  ;;  %v1329_v36 = vld [vmem:[#allocation8 + $0x84] sm:$0xf]  ;;  %v1205_v37 = vld [vmem:[#allocation8 + $0x88] sm:$0xf0] }
  0x40   :  { %302 = vmatmul.bf16.vlgmr.msra.gmra.mxu1 %v135_v50  ;;  %687 = vmatpush.bf16.msrb.mxu0 %v1200_v7  ;;  %v131_v50 = vld [vmem:[#allocation2 + $0x60] sm:$0xff]  ;;  %v1220_v7 = vor.u32 %v1334_v5, %v1219_v4  ;;  %v1208_v38 = vor.u32 %v1329_v36, %v1205_v37 }
  0x41   :  { %736 = vmatpush.bf16.msrb.mxu1 %v1264_v10  ;;  %v141_v55 = vpack.c.bf16 %v132_v51, %v131_v50  ;;  %642 = vmatpush.bf16.msra.mxu3 %v1228_v60  ;;  %v1221_v10 = vld [vmem:[#allocation8 + $0xa8] sm:$0xf0]  ;;  %v159_v40 = vld [vmem:[#allocation7] sm:$0x3] }
  0x42   :  { %v1224_v12 = vor.u32 %v1333_v9, %v1221_v10  ;;  %v1659_v43 = vperm.slane %v159_v40, 0  ;;  %v1661_v44 = vperm.slane %v159_v40, 1 }
  0x44   :  { %688 = vmatpush.bf16.msrb.mxu0 %v1192_v22  ;;  %v1331_v22 = vld [vmem:[#allocation8 + $0x94] sm:$0xf] }
  0x45   :  { %737 = vmatpush.bf16.msrb.mxu1 %v1256_v26  ;;  %643 = vmatpush.bf16.msra.mxu3 %v1220_v7  ;;  %v1216_v24 = vor.u32 %v1331_v22, %v1213_v23  ;;  %v1139_v26 = vld [vmem:[#allocation8] sm:$0xf] }
  0x46   :  { %v1140_v29 = vor.u32 %v1314_v27, %v1139_v26 }
  0x48   :  { %689 = vmatpush.bf16.msrb.mxu0 %v1184_v35  ;;  %v1144_v35 = vor.u32 %v1313_v31, %v1141_v32 }
  0x49   :  { %738 = vmatpush.bf16.msrb.mxu1 %v1248_v39  ;;  %644 = vmatpush.bf16.msra.mxu3 %v1212_v20  ;;  %v142_v39 = vpack.c.bf16 %v134_v33, %v133_v25 }
  0x4c   :  { %690 = vmatpush.bf16.msrb.mxu0 %v1176_v48 }
  0x4d   :  { %739 = vmatpush.bf16.msrb.mxu1 %v1240_v49  ;;  %645 = vmatpush.bf16.msra.mxu3 %v1204_v34 }
  0x4f   :  { %258 = vmatmul.bf16.gmra.mxu0 %v136_v53 }
  0x50   :  { %307 = vmatmul.bf16.gmra.mxu1 %v136_v53  ;;  %v1320_v53 = vld [vmem:[#allocation8 + $0x34] sm:$0xf0] }
  0x5f   :  { %263 = vmatmul.bf16.gmra.mxu0 %v137_v56 }
  0x60   :  { %312 = vmatmul.bf16.gmra.mxu1 %v137_v56  ;;  %v1164_v56 = vor.u32 %v1320_v53, %v1163_v52 }
  0x62   :  { %593 = vmatpush.bf16.msra.mxu2 %v1164_v56 }
  0x66   :  { %594 = vmatpush.bf16.msra.mxu2 %v1156_v3 }
  0x6f   :  { %268 = vmatmul.bf16.gmra.mxu0 %v138_v59 }
  0x70   :  { %317 = vmatmul.bf16.gmra.mxu1 %v138_v59  ;;  %v1165_v59 = vld [vmem:[#allocation8 + $0x38] sm:$0xf0] }
  0x71   :  { %v1168_v61 = vor.u32 %v1319_v58, %v1165_v59 }
  0x73   :  { %691 = vmatpush.bf16.msrb.mxu0 %v1168_v61 }
  0x77   :  { %692 = vmatpush.bf16.msrb.mxu0 %v1160_v11 }
  0x7b   :  { %693 = vmatpush.bf16.msrb.mxu0 %v1152_v21 }
  0x7f   :  { %273 = vmatmul.bf16.gmra.mxu0 %v139_v62 }
  0x80   :  { %322 = vmatmul.bf16.gmra.mxu1 %v139_v62  ;;  %v1335_v62 = vld [vmem:[#allocation8 + $0xb4] sm:$0xf]  ;;  %694 = vmatpush.bf16.msrb.mxu0 %v1144_v35 }
  0x81   :  { %v1232_v0 = vor.u32 %v1335_v62, %v1229_v63 }
  0x83   :  { %740 = vmatpush.bf16.msrb.mxu1 %v1232_v0 }
  0x87   :  { %741 = vmatpush.bf16.msrb.mxu1 %v1224_v12 }
  0x8b   :  { %742 = vmatpush.bf16.msrb.mxu1 %v1216_v24 }
  0x8f   :  { %278 = vmatmul.bf16.gmra.mxu0 %v140_v13  ;;  %743 = vmatpush.bf16.msrb.mxu1 %v1208_v38 }
  0x90   :  { %327 = vmatmul.bf16.gmra.mxu1 %v140_v13  ;;  %v1147_v13 = vld [vmem:[#allocation8 + $0x10] sm:$0xf] }
  0x91   :  { %v1148_v16 = vor.u32 %v1316_v14, %v1147_v13 }
  0x93   :  { %595 = vmatpush.bf16.msra.mxu2 %v1148_v16 }
  0x97   :  { %596 = vmatpush.bf16.msra.mxu2 %v1140_v29 }
  0x9f   :  { %283 = vmatmul.bf16.gmra.mxu0 %v141_v55 }
  0xa0   :  { %332 = vmatmul.bf16.gmra.mxu1 %v141_v55 }
  0xaf   :  { %288 = vmatmul.bf16.gmra.mxu0 %v142_v39 }
  0xb0   :  { %337 = vmatmul.bf16.gmra.mxu1 %v142_v39 }
  0xbc   :  { %v254_v41 = vpop.f32.mrf.mxu0 }
  0xbd   :  { %v303_v42 = vpop.f32.mrf.mxu1  ;;  %v255_v45 = vadd.f32 %v254_v41, %v1659_v43 }
  0xbe   :  { %v304_v46 = vadd.f32 %v303_v42, %v1661_v44 }
  0xbf   :  { %v343_v51 = vmax.f32 %v255_v45, 0.0 }
  0xc0   :  { %v344_v53 = vmax.f32 %v304_v46, 0.0 }
  0xc4   :  { %v256_v47 = vpop.f32.mrf.mxu0 }
  0xc5   :  { %v257_v48 = vadd.f32 %v256_v47, %v1659_v43  ;;  %v305_v49 = vpop.f32.mrf.mxu1 }
  0xc6   :  { %v306_v50 = vadd.f32 %v305_v49, %v1661_v44 }
  0xc7   :  { %v345_v52 = vmax.f32 %v257_v48, 0.0 }
  0xc8   :  { %v346_v54 = vmax.f32 %v306_v50, 0.0 }
  0xc9   :  { %v375_v55 = vpack.c.bf16 %v345_v52, %v343_v51 }
  0xca   :  { %v376_v56 = vpack.c.bf16 %v346_v54, %v344_v53 }
  0xcb   :  { %597 = vmatmul.bf16.vlgmr.msra.gmra.mxu2 %v375_v55  ;;  %695 = vmatmul.bf16.vlgmr.msrb.gmra.mxu0 %v375_v55 }
  0xcc   :  { %646 = vmatmul.bf16.vlgmr.msra.gmra.mxu3 %v376_v56  ;;  %744 = vmatmul.bf16.vlgmr.msrb.gmra.mxu1 %v376_v56  ;;  %v259_v57 = vpop.f32.mrf.mxu0 }
  0xcd   :  { %v308_v58 = vpop.f32.mrf.mxu1  ;;  %v260_v59 = vadd.f32 %v259_v57, %v1659_v43 }
  0xce   :  { %v309_v60 = vadd.f32 %v308_v58, %v1661_v44 }
  0xcf   :  { %v347_v1 = vmax.f32 %v260_v59, 0.0 }
  0xd0   :  { %v348_v3 = vmax.f32 %v309_v60, 0.0 }
  0xd4   :  { %v261_v61 = vpop.f32.mrf.mxu0 }
  0xd5   :  { %v262_v62 = vadd.f32 %v261_v61, %v1659_v43  ;;  %v310_v63 = vpop.f32.mrf.mxu1 }
  0xd6   :  { %v311_v0 = vadd.f32 %v310_v63, %v1661_v44 }
  0xd7   :  { %v349_v2 = vmax.f32 %v262_v62, 0.0 }
  0xd8   :  { %v350_v4 = vmax.f32 %v311_v0, 0.0 }
  0xd9   :  { %v377_v5 = vpack.c.bf16 %v349_v2, %v347_v1 }
  0xda   :  { %v378_v6 = vpack.c.bf16 %v350_v4, %v348_v3 }
  0xdb   :  { %602 = vmatmul.bf16.gmra.mxu2 %v377_v5  ;;  %700 = vmatmul.bf16.gmra.mxu0 %v377_v5 }
  0xdc   :  { %651 = vmatmul.bf16.gmra.mxu3 %v378_v6  ;;  %749 = vmatmul.bf16.gmra.mxu1 %v378_v6  ;;  %v264_v7 = vpop.f32.mrf.mxu0 }
  0xdd   :  { %v313_v8 = vpop.f32.mrf.mxu1  ;;  %v265_v9 = vadd.f32 %v264_v7, %v1659_v43 }
  0xde   :  { %v314_v10 = vadd.f32 %v313_v8, %v1661_v44 }
  0xdf   :  { %v351_v15 = vmax.f32 %v265_v9, 0.0 }
  0xe0   :  { %v352_v17 = vmax.f32 %v314_v10, 0.0 }
  0xe4   :  { %v266_v11 = vpop.f32.mrf.mxu0 }
  0xe5   :  { %v267_v12 = vadd.f32 %v266_v11, %v1659_v43  ;;  %v315_v13 = vpop.f32.mrf.mxu1 }
  0xe6   :  { %v316_v14 = vadd.f32 %v315_v13, %v1661_v44 }
  0xe7   :  { %v353_v16 = vmax.f32 %v267_v12, 0.0 }
  0xe8   :  { %v354_v18 = vmax.f32 %v316_v14, 0.0 }
  0xe9   :  { %v379_v19 = vpack.c.bf16 %v353_v16, %v351_v15 }
  0xea   :  { %v380_v20 = vpack.c.bf16 %v354_v18, %v352_v17 }
  0xeb   :  { %607 = vmatmul.bf16.gmra.mxu2 %v379_v19  ;;  %705 = vmatmul.bf16.gmra.mxu0 %v379_v19 }
  0xec   :  { %656 = vmatmul.bf16.gmra.mxu3 %v380_v20  ;;  %754 = vmatmul.bf16.gmra.mxu1 %v380_v20  ;;  %v269_v21 = vpop.f32.mrf.mxu0 }
  0xed   :  { %v318_v22 = vpop.f32.mrf.mxu1  ;;  %v270_v23 = vadd.f32 %v269_v21, %v1659_v43 }
  0xee   :  { %v319_v24 = vadd.f32 %v318_v22, %v1661_v44 }
  0xef   :  { %v355_v29 = vmax.f32 %v270_v23, 0.0 }
  0xf0   :  { %v356_v31 = vmax.f32 %v319_v24, 0.0 }
  0xf4   :  { %v271_v25 = vpop.f32.mrf.mxu0 }
  0xf5   :  { %v272_v26 = vadd.f32 %v271_v25, %v1659_v43  ;;  %v320_v27 = vpop.f32.mrf.mxu1 }
  0xf6   :  { %v321_v28 = vadd.f32 %v320_v27, %v1661_v44 }
  0xf7   :  { %v357_v30 = vmax.f32 %v272_v26, 0.0 }
  0xf8   :  { %v358_v32 = vmax.f32 %v321_v28, 0.0 }
  0xf9   :  { %v381_v33 = vpack.c.bf16 %v357_v30, %v355_v29 }
  0xfa   :  { %v382_v34 = vpack.c.bf16 %v358_v32, %v356_v31 }
  0xfb   :  { %612 = vmatmul.bf16.gmra.mxu2 %v381_v33  ;;  %710 = vmatmul.bf16.gmra.mxu0 %v381_v33 }
  0xfc   :  { %661 = vmatmul.bf16.gmra.mxu3 %v382_v34  ;;  %759 = vmatmul.bf16.gmra.mxu1 %v382_v34  ;;  %v274_v35 = vpop.f32.mrf.mxu0 }
  0xfd   :  { %v323_v36 = vpop.f32.mrf.mxu1  ;;  %v275_v37 = vadd.f32 %v274_v35, %v1659_v43 }
  0xfe   :  { %v324_v38 = vadd.f32 %v323_v36, %v1661_v44 }
  0xff   :  { %v359_v45 = vmax.f32 %v275_v37, 0.0 }
 0x100   :  { %v360_v47 = vmax.f32 %v324_v38, 0.0 }
 0x104   :  { %v276_v39 = vpop.f32.mrf.mxu0 }
 0x105   :  { %v277_v40 = vadd.f32 %v276_v39, %v1659_v43  ;;  %v325_v41 = vpop.f32.mrf.mxu1 }
 0x106   :  { %v326_v42 = vadd.f32 %v325_v41, %v1661_v44 }
 0x107   :  { %v361_v46 = vmax.f32 %v277_v40, 0.0 }
 0x108   :  { %v362_v48 = vmax.f32 %v326_v42, 0.0 }
 0x109   :  { %v383_v49 = vpack.c.bf16 %v361_v46, %v359_v45  ;;  %v1716_v45 = vld [vmem:[%s1775_s4] sm:$0x3]  ;;  %s1591_s4 = smov [#allocation13]  }
 0x10a   :  { %v384_v50 = vpack.c.bf16 %v362_v48, %v360_v47  ;;  %v1719_v46 = vperm.slane %v1716_v45, 0  ;;  %s1055_s8 = sshll.u32 %s1591_s4, 4  ;;  %s1056_s8 = int_to_ptr.vmem [resolvable:$true] %s1055_s8 }
 0x10b   :  { %617 = vmatmul.bf16.gmra.mxu2 %v383_v49  ;;  %715 = vmatmul.bf16.gmra.mxu0 %v383_v49 }
 0x10c   :  { %666 = vmatmul.bf16.gmra.mxu3 %v384_v50  ;;  %764 = vmatmul.bf16.gmra.mxu1 %v384_v50  ;;  %v279_v51 = vpop.f32.mrf.mxu0 }
 0x10d   :  { %v328_v52 = vpop.f32.mrf.mxu1  ;;  %v280_v53 = vadd.f32 %v279_v51, %v1659_v43 }
 0x10e   :  { %v329_v54 = vadd.f32 %v328_v52, %v1661_v44 }
 0x10f   :  { %v363_v59 = vmax.f32 %v280_v53, 0.0 }
 0x110   :  { %v364_v61 = vmax.f32 %v329_v54, 0.0 }
 0x114   :  { %v281_v55 = vpop.f32.mrf.mxu0 }
 0x115   :  { %v282_v56 = vadd.f32 %v281_v55, %v1659_v43  ;;  %v330_v57 = vpop.f32.mrf.mxu1 }
 0x116   :  { %v331_v58 = vadd.f32 %v330_v57, %v1661_v44 }
 0x117   :  { %v365_v60 = vmax.f32 %v282_v56, 0.0 }
 0x118   :  { %v366_v62 = vmax.f32 %v331_v58, 0.0 }
 0x119   :  { %v385_v63 = vpack.c.bf16 %v365_v60, %v363_v59 }
 0x11a   :  { %v386_v0 = vpack.c.bf16 %v366_v62, %v364_v61 }
 0x11b   :  { %622 = vmatmul.bf16.gmra.mxu2 %v385_v63  ;;  %720 = vmatmul.bf16.gmra.mxu0 %v385_v63 }
 0x11c   :  { %671 = vmatmul.bf16.gmra.mxu3 %v386_v0  ;;  %769 = vmatmul.bf16.gmra.mxu1 %v386_v0  ;;  %v284_v1 = vpop.f32.mrf.mxu0 }
 0x11d   :  { %v333_v2 = vpop.f32.mrf.mxu1  ;;  %v285_v3 = vadd.f32 %v284_v1, %v1659_v43 }
 0x11e   :  { %v334_v4 = vadd.f32 %v333_v2, %v1661_v44 }
 0x11f   :  { %v367_v9 = vmax.f32 %v285_v3, 0.0 }
 0x120   :  { %v368_v11 = vmax.f32 %v334_v4, 0.0 }
 0x124   :  { %v286_v5 = vpop.f32.mrf.mxu0 }
 0x125   :  { %v287_v6 = vadd.f32 %v286_v5, %v1659_v43  ;;  %v335_v7 = vpop.f32.mrf.mxu1 }
 0x126   :  { %v336_v8 = vadd.f32 %v335_v7, %v1661_v44 }
 0x127   :  { %v369_v10 = vmax.f32 %v287_v6, 0.0 }
 0x128   :  { %v370_v12 = vmax.f32 %v336_v8, 0.0 }
 0x129   :  { %v387_v13 = vpack.c.bf16 %v369_v10, %v367_v9 }
 0x12a   :  { %v388_v14 = vpack.c.bf16 %v370_v12, %v368_v11 }
 0x12b   :  { %627 = vmatmul.bf16.gmra.mxu2 %v387_v13  ;;  %725 = vmatmul.bf16.gmra.mxu0 %v387_v13 }
 0x12c   :  { %676 = vmatmul.bf16.gmra.mxu3 %v388_v14  ;;  %774 = vmatmul.bf16.gmra.mxu1 %v388_v14  ;;  %v289_v15 = vpop.f32.mrf.mxu0 }
 0x12d   :  { %v338_v16 = vpop.f32.mrf.mxu1  ;;  %v290_v17 = vadd.f32 %v289_v15, %v1659_v43 }
 0x12e   :  { %v339_v18 = vadd.f32 %v338_v16, %v1661_v44 }
 0x12f   :  { %v371_v23 = vmax.f32 %v290_v17, 0.0 }
 0x130   :  { %v372_v25 = vmax.f32 %v339_v18, 0.0 }
 0x134   :  { %v291_v19 = vpop.f32.mrf.mxu0 }
 0x135   :  { %v292_v20 = vadd.f32 %v291_v19, %v1659_v43  ;;  %v340_v21 = vpop.f32.mrf.mxu1 }
 0x136   :  { %v341_v22 = vadd.f32 %v340_v21, %v1661_v44 }
 0x137   :  { %v373_v24 = vmax.f32 %v292_v20, 0.0 }
 0x138   :  { %v374_v26 = vmax.f32 %v341_v22, 0.0 }
 0x139   :  { %v389_v27 = vpack.c.bf16 %v373_v24, %v371_v23 }
 0x13a   :  { %v390_v28 = vpack.c.bf16 %v374_v26, %v372_v25 }
 0x13b   :  { %632 = vmatmul.bf16.gmra.mxu2 %v389_v27  ;;  %730 = vmatmul.bf16.gmra.mxu0 %v389_v27 }
 0x13c   :  { %681 = vmatmul.bf16.gmra.mxu3 %v390_v28  ;;  %779 = vmatmul.bf16.gmra.mxu1 %v390_v28 }
 0x14e   :  { %v1695_v29 = vpop.f32.mrf.mxu2 }
 0x14f   :  { %v1697_v30 = vpop.f32.mrf.mxu3 }
 0x156   :  { %v1699_v31 = vpop.f32.mrf.mxu2 }
 0x157   :  { %v1701_v43 = vpop.f32.mrf.mxu3 }
 0x15e   :  { %v1703_v32 = vpop.f32.mrf.mxu2 }
 0x15f   :  { %v1705_v44 = vpop.f32.mrf.mxu3 }
 0x166   :  { %v1707_v33 = vpop.f32.mrf.mxu2 }
 0x167   :  { %v1709_v34 = vpop.f32.mrf.mxu3 }
 0x16e   :  { %v608_v35 = vpop.f32.mrf.mxu2 }
 0x16f   :  { %v1711_v36 = vpop.f32.mrf.mxu3 }
 0x176   :  { %v610_v37 = vpop.f32.mrf.mxu2 }
 0x177   :  { %v659_v38 = vpop.f32.mrf.mxu3  ;;  %v611_v25 = vadd.f32 %v610_v37, %v1719_v46 }
 0x17e   :  { %v613_v39 = vpop.f32.mrf.mxu2 }
 0x17f   :  { %v662_v40 = vpop.f32.mrf.mxu3  ;;  %v614_v23 = vadd.f32 %v613_v39, %v1719_v46  ;;  %v604_v39 = vadd.f32 %v1703_v32, %v1719_v46 }
 0x186   :  { %v615_v41 = vpop.f32.mrf.mxu2 }
 0x187   :  { %v664_v42 = vpop.f32.mrf.mxu3  ;;  %v616_v19 = vadd.f32 %v615_v41, %v1719_v46  ;;  %v606_v41 = vadd.f32 %v1707_v33, %v1719_v46  ;;  %v599_v33 = vadd.f32 %v1695_v29, %v1719_v46  ;;  %v1346_v29 = vld [vmem:[#allocation10 + $0x8] sm:$0xff] }
 0x189   :  { %v665_v26 = vadd.f32 %v664_v42, %v616_v19  ;;  %v601_v42 = vadd.f32 %v1699_v31, %v1719_v46  ;;  %v1385_v19 = vld [vmem:[#allocation11 + $0x8] sm:$0xff]  }
 0x18b   :  { %v650_v32 = vadd.f32 %v1701_v43, %v601_v42  ;;  %v1349_v43 = vld [vmem:[#allocation10 + $0x20] sm:$0xff] }
 0x18d   :  { %v787_v31 = vmax.f32 %v650_v32, 0.0  ;;  %v1747_v32 = vperm.slane %v1716_v45, 1 }
 0x18e   :  { %v618_v47 = vpop.f32.mrf.mxu2 }
 0x18f   :  { %v619_v48 = vadd.f32 %v618_v47, %v1719_v46  ;;  %v667_v49 = vpop.f32.mrf.mxu3  ;;  %v609_v47 = vadd.f32 %v608_v35, %v1719_v46  ;;  %v655_v35 = vadd.f32 %v1709_v34, %v606_v41 }
 0x191   :  { %v668_v50 = vadd.f32 %v667_v49, %v619_v48  ;;  %v663_v48 = vadd.f32 %v662_v40, %v614_v23 }
 0x193   :  { %v801_v49 = vmax.f32 %v668_v50, 0.0  ;;  %v797_v37 = vmax.f32 %v663_v48, 0.0 }
 0x196   :  { %v620_v51 = vpop.f32.mrf.mxu2 }
 0x197   :  { %v669_v52 = vpop.f32.mrf.mxu3  ;;  %v621_v13 = vadd.f32 %v620_v51, %v1719_v46  ;;  %v660_v51 = vadd.f32 %v659_v38, %v611_v25  ;;  %v653_v38 = vadd.f32 %v1705_v44, %v604_v39  ;;  %v1347_v44 = vld [vmem:[#allocation10 + $0x10] sm:$0xff]  ;;  %v1387_v25 = vld [vmem:[#allocation11 + $0x18] sm:$0xff]  }
 0x199   :  { %v670_v20 = vadd.f32 %v669_v52, %v621_v13  ;;  %v799_v52 = vmax.f32 %v665_v26, 0.0  ;;  %v795_v40 = vmax.f32 %v660_v51, 0.0  ;;  %v1367_v26 = vunpack.c.l.bf16 %v1387_v25 }
 0x19b   :  { %v803_v27 = vmax.f32 %v670_v20, 0.0  ;;  %v820_v50 = vpack.c.bf16 %v799_v52, %v797_v37  ;;  %v1359_v20 = vunpack.c.l.bf16 %v1385_v19  ;;  %v696_v52 = vpop.f32.mrf.mxu0 }
 0x19e   :  { %v623_v53 = vpop.f32.mrf.mxu2 }
 0x19f   :  { %v672_v54 = vpop.f32.mrf.mxu3  ;;  %v624_v9 = vadd.f32 %v623_v53, %v1719_v46  ;;  %v821_v53 = vpack.c.bf16 %v803_v27, %v801_v49  ;;  %v1368_v27 = vunpack.c.h.bf16 %v1387_v25  ;;  %v1389_v49 = vld [vmem:[#allocation11 + $0x28] sm:$0xff]  }
 0x1a0   :  { %v1375_v41 = vunpack.c.l.bf16 %v1389_v49  ;;  %v1376_v51 = vunpack.c.h.bf16 %v1389_v49 }
 0x1a1   :  { %v673_v17 = vadd.f32 %v672_v54, %v624_v9  ;;  %v658_v54 = vadd.f32 %v1711_v36, %v609_v47 }
 0x1a3   :  { %v805_v24 = vmax.f32 %v673_v17, 0.0  ;;  %v698_v37 = vpop.f32.mrf.mxu0 }
 0x1a6   :  { %v625_v55 = vpop.f32.mrf.mxu2 }
 0x1a7   :  { %v674_v56 = vpop.f32.mrf.mxu3  ;;  %v626_v6 = vadd.f32 %v625_v55, %v1719_v46  ;;  %v793_v55 = vmax.f32 %v658_v54, 0.0  ;;  %v745_v54 = vpop.f32.mrf.mxu1 }
 0x1a9   :  { %v675_v14 = vadd.f32 %v674_v56, %v626_v6  ;;  %v791_v56 = vmax.f32 %v655_v35, 0.0  ;;  %v819_v36 = vpack.c.bf16 %v795_v40, %v793_v55  ;;  %v1391_v40 = vld [vmem:[#allocation11 + $0x38] sm:$0xff]  }
 0x1aa   :  { %v1384_v55 = vunpack.c.h.bf16 %v1391_v40 }
 0x1ab   :  { %v807_v21 = vmax.f32 %v675_v14, 0.0 }
 0x1ad   :  { %v822_v28 = vpack.c.bf16 %v807_v21, %v805_v24  ;;  %v1360_v21 = vunpack.c.h.bf16 %v1385_v19 }
 0x1ae   :  { %v628_v57 = vpop.f32.mrf.mxu2 }
 0x1af   :  { %v677_v58 = vpop.f32.mrf.mxu3  ;;  %v629_v2 = vadd.f32 %v628_v57, %v1719_v46  ;;  %v648_v57 = vadd.f32 %v1697_v30, %v599_v33  ;;  %v1351_v30 = vld [vmem:[#allocation10 + $0x30] sm:$0xff]  ;;  %v747_v35 = vpop.f32.mrf.mxu1 }
 0x1b0   :  { %v701_v33 = vpop.f32.mrf.mxu0 }
 0x1b1   :  { %v678_v10 = vadd.f32 %v677_v58, %v629_v2  ;;  %v789_v58 = vmax.f32 %v653_v38, 0.0  ;;  %v785_v34 = vmax.f32 %v648_v57, 0.0 }
 0x1b3   :  { %v809_v18 = vmax.f32 %v678_v10, 0.0 }
 0x1b6   :  { %v630_v59 = vpop.f32.mrf.mxu2 }
 0x1b7   :  { %v679_v60 = vpop.f32.mrf.mxu3  ;;  %v631_v0 = vadd.f32 %v630_v59, %v1719_v46  ;;  %v818_v59 = vpack.c.bf16 %v791_v56, %v789_v58  ;;  %v750_v38 = vpop.f32.mrf.mxu1 }
 0x1b8   :  { %v703_v56 = vpop.f32.mrf.mxu0 }
 0x1b9   :  { %v680_v7 = vadd.f32 %v679_v60, %v631_v0  ;;  %v817_v60 = vpack.c.bf16 %v787_v31, %v785_v34  ;;  %v699_v34 = vadd.f32 %v698_v37, %v1747_v32 }
 0x1bb   :  { %v811_v15 = vmax.f32 %v680_v7, 0.0 }
 0x1bd   :  { %v823_v22 = vpack.c.bf16 %v811_v15, %v809_v18 }
 0x1be   :  { %v633_v61 = vpop.f32.mrf.mxu2 }
 0x1bf   :  { %v682_v62 = vpop.f32.mrf.mxu3  ;;  %v634_v63 = vadd.f32 %v633_v61, %v1719_v46  ;;  %v1345_v61 = vld [vmem:[#allocation10] sm:$0xff]  ;;  %v752_v57 = vpop.f32.mrf.mxu1 }
 0x1c0   :  { %v706_v31 = vpop.f32.mrf.mxu0 }
 0x1c1   :  { %v683_v3 = vadd.f32 %v682_v62, %v634_v63  ;;  %v1350_v62 = vld [vmem:[#allocation10 + $0x28] sm:$0xff]  ;;  %v1352_v63 = vld [vmem:[#allocation10 + $0x38] sm:$0xff] }
 0x1c3   :  { %v813_v11 = vmax.f32 %v683_v3, 0.0 }
 0x1c6   :  { %v635_v1 = vpop.f32.mrf.mxu2 }
 0x1c7   :  { %v636_v4 = vadd.f32 %v635_v1, %v1719_v46  ;;  %v684_v5 = vpop.f32.mrf.mxu3  ;;  %v1348_v46 = vld [vmem:[#allocation10 + $0x18] sm:$0xff] }
 0x1c8   :  { %v708_v45 = vpop.f32.mrf.mxu0 }
 0x1c9   :  { %v685_v8 = vadd.f32 %v684_v5, %v636_v4 }
 0x1cb   :  { %v815_v12 = vmax.f32 %v685_v8, 0.0 }
 0x1cd   :  { %v824_v16 = vpack.c.bf16 %v815_v12, %v813_v11 }
 0x1cf   :  { %889 = vmatpush.bf16.msrb.mxu2 %v824_v16  ;;  %v1354_v16 = vld [vmem:[#allocation11] sm:$0xff]  }
 0x1d0   :  { %v1355_v17 = vunpack.c.l.bf16 %v1354_v16  ;;  %v1356_v18 = vunpack.c.h.bf16 %v1354_v16 }
 0x1d3   :  { %890 = vmatpush.bf16.msrb.mxu2 %v823_v22  ;;  %v1386_v22 = vld [vmem:[#allocation11 + $0x10] sm:$0xff]  }
 0x1d4   :  { %v1363_v23 = vunpack.c.l.bf16 %v1386_v22  ;;  %v1364_v24 = vunpack.c.h.bf16 %v1386_v22 }
 0x1d7   :  { %891 = vmatpush.bf16.msrb.mxu2 %v822_v28  ;;  %v1388_v28 = vld [vmem:[#allocation11 + $0x20] sm:$0xff]  }
 0x1d8   :  { %v1371_v47 = vunpack.c.l.bf16 %v1388_v28  ;;  %v1372_v48 = vunpack.c.h.bf16 %v1388_v28 }
 0x1db   :  { %892 = vmatpush.bf16.msrb.mxu2 %v821_v53  ;;  %v1390_v53 = vld [vmem:[#allocation11 + $0x30] sm:$0xff]  }
 0x1dc   :  { %v1379_v39 = vunpack.c.l.bf16 %v1390_v53  ;;  %v1380_v42 = vunpack.c.h.bf16 %v1390_v53 }
 0x1df   :  { %893 = vmatpush.bf16.msrb.mxu2 %v820_v50  ;;  %v1383_v50 = vunpack.c.l.bf16 %v1391_v40 }
 0x1e3   :  { %894 = vmatpush.bf16.msrb.mxu2 %v819_v36  ;;  %v697_v36 = vadd.f32 %v696_v52, %v1747_v32 }
 0x1e5   :  { %v746_v58 = vadd.f32 %v745_v54, %v697_v36 }
 0x1e7   :  { %895 = vmatpush.bf16.msrb.mxu2 %v818_v59  ;;  %v786_v59 = vmax.f32 %v746_v58, 0.0 }
 0x1eb   :  { %896 = vmatpush.bf16.msrb.mxu2 %v817_v60 }
 0x1ee   :  { %897 = vmatmul.bf16.vlgmr.msrb.gmra.mxu2 %v1345_v61 }
 0x1fe   :  { %902 = vmatmul.bf16.gmra.mxu2 %v1346_v29  ;;  %v748_v29 = vadd.f32 %v747_v35, %v699_v34 }
 0x20e   :  { %907 = vmatmul.bf16.gmra.mxu2 %v1347_v44  ;;  %v755_v44 = vpop.f32.mrf.mxu1 }
 0x21e   :  { %912 = vmatmul.bf16.gmra.mxu2 %v1348_v46  ;;  %v788_v46 = vmax.f32 %v748_v29, 0.0 }
 0x22e   :  { %917 = vmatmul.bf16.gmra.mxu2 %v1349_v43  ;;  %v702_v43 = vadd.f32 %v701_v33, %v1747_v32 }
 0x23e   :  { %922 = vmatmul.bf16.gmra.mxu2 %v1350_v62 }
 0x24e   :  { %927 = vmatmul.bf16.gmra.mxu2 %v1351_v30 }
 0x25e   :  { %932 = vmatmul.bf16.gmra.mxu2 %v1352_v63  ;;  %v751_v63 = vadd.f32 %v750_v38, %v702_v43 }
 0x271   :  { %v898_v0 = vpop.f32.mrf.mxu2 }
 0x279   :  { %v900_v1 = vpop.f32.mrf.mxu2 }
 0x281   :  { %v903_v2 = vpop.f32.mrf.mxu2 }
 0x289   :  { %v905_v3 = vpop.f32.mrf.mxu2 }
 0x291   :  { %v908_v4 = vpop.f32.mrf.mxu2 }
 0x299   :  { %v910_v5 = vpop.f32.mrf.mxu2 }
 0x2a1   :  { %v913_v6 = vpop.f32.mrf.mxu2 }
 0x2a9   :  { %v915_v7 = vpop.f32.mrf.mxu2 }
 0x2b1   :  { %v918_v8 = vpop.f32.mrf.mxu2 }
 0x2b9   :  { %v920_v9 = vpop.f32.mrf.mxu2 }
 0x2c1   :  { %v923_v10 = vpop.f32.mrf.mxu2 }
 0x2c9   :  { %v925_v11 = vpop.f32.mrf.mxu2 }
 0x2d1   :  { %v928_v12 = vpop.f32.mrf.mxu2 }
 0x2d9   :  { %v930_v13 = vpop.f32.mrf.mxu2 }
 0x2e1   :  { %v933_v14 = vpop.f32.mrf.mxu2 }
 0x2e9   :  { %v935_v15 = vpop.f32.mrf.mxu2 }
 0x2ea   :  { %970 = vmatpush.msrb.mxu3 %v935_v15  ;;  %v709_v15 = vadd.f32 %v708_v45, %v1747_v32 }
 0x2ec   :  { %971 = vmatpush.msrb.mxu3 %v933_v14 }
 0x2ee   :  { %972 = vmatpush.msrb.mxu3 %v930_v13 }
 0x2f0   :  { %973 = vmatpush.msrb.mxu3 %v928_v12 }
 0x2f2   :  { %974 = vmatpush.msrb.mxu3 %v925_v11 }
 0x2f4   :  { %975 = vmatpush.msrb.mxu3 %v923_v10 }
 0x2f6   :  { %976 = vmatpush.msrb.mxu3 %v920_v9 }
 0x2f8   :  { %977 = vmatpush.msrb.mxu3 %v918_v8  ;;  %v707_v8 = vadd.f32 %v706_v31, %v1747_v32 }
 0x2fa   :  { %978 = vmatpush.msrb.mxu3 %v915_v7  ;;  %v756_v12 = vadd.f32 %v755_v44, %v707_v8 }
 0x2fc   :  { %979 = vmatpush.msrb.mxu3 %v913_v6  ;;  %v794_v14 = vmax.f32 %v756_v12, 0.0 }
 0x2fe   :  { %980 = vmatpush.msrb.mxu3 %v910_v5  ;;  %v711_v5 = vpop.f32.mrf.mxu0 }
 0x2ff   :  { %v712_v22 = vadd.f32 %v711_v5, %v1747_v32 }
 0x300   :  { %981 = vmatpush.msrb.mxu3 %v908_v4 }
 0x302   :  { %982 = vmatpush.msrb.mxu3 %v905_v3 }
 0x304   :  { %983 = vmatpush.msrb.mxu3 %v903_v2  ;;  %v704_v2 = vadd.f32 %v703_v56, %v1747_v32 }
 0x306   :  { %984 = vmatpush.msrb.mxu3 %v900_v1  ;;  %v790_v1 = vmax.f32 %v751_v63, 0.0  ;;  %v753_v6 = vadd.f32 %v752_v57, %v704_v2  ;;  %v713_v13 = vpop.f32.mrf.mxu0 }
 0x307   :  { %v714_v28 = vadd.f32 %v713_v13, %v1747_v32 }
 0x308   :  { %985 = vmatpush.msrb.mxu3 %v898_v0  ;;  %v757_v0 = vpop.f32.mrf.mxu1  ;;  %v792_v7 = vmax.f32 %v753_v6, 0.0 }
 0x309   :  { %986 = vmatmul.f32.vlgmr.msrb.gmra.mxu3 %v1355_v17  ;;  %v758_v19 = vadd.f32 %v757_v0, %v709_v15 }
 0x310   :  { %v760_v9 = vpop.f32.mrf.mxu1 }
 0x311   :  { %989 = vmatmul.f32.gmra.mxu3 %v1356_v18  ;;  %v761_v25 = vadd.f32 %v760_v9, %v712_v22 }
 0x318   :  { %v762_v18 = vpop.f32.mrf.mxu1 }
 0x319   :  { %992 = vmatmul.f32.gmra.mxu3 %v1359_v20  ;;  %v716_v20 = vpop.f32.mrf.mxu0 }
 0x31a   :  { %v717_v53 = vadd.f32 %v716_v20, %v1747_v32 }
 0x321   :  { %995 = vmatmul.f32.gmra.mxu3 %v1360_v21  ;;  %v796_v21 = vmax.f32 %v758_v19, 0.0 }
 0x329   :  { %998 = vmatmul.f32.gmra.mxu3 %v1363_v23 }
 0x331   :  { %1001 = vmatmul.f32.gmra.mxu3 %v1364_v24 }
 0x339   :  { %1004 = vmatmul.f32.gmra.mxu3 %v1367_v26  ;;  %v765_v26 = vpop.f32.mrf.mxu1 }
 0x341   :  { %1007 = vmatmul.f32.gmra.mxu3 %v1368_v27  ;;  %v798_v27 = vmax.f32 %v761_v25, 0.0 }
 0x349   :  { %1010 = vmatmul.f32.gmra.mxu3 %v1371_v47  ;;  %v718_v47 = vpop.f32.mrf.mxu0 }
 0x34a   :  { %v719_v40 = vadd.f32 %v718_v47, %v1747_v32 }
 0x351   :  { %1013 = vmatmul.f32.gmra.mxu3 %v1372_v48  ;;  %v721_v37 = vpop.f32.mrf.mxu0 }
 0x352   :  { %v722_v57 = vadd.f32 %v721_v37, %v1747_v32 }
 0x359   :  { %1016 = vmatmul.f32.gmra.mxu3 %v1375_v41  ;;  %v763_v41 = vadd.f32 %v762_v18, %v714_v28  ;;  %v723_v56 = vpop.f32.mrf.mxu0 }
 0x35a   :  { %v724_v29 = vadd.f32 %v723_v56, %v1747_v32 }
 0x35b   :  { %v800_v52 = vmax.f32 %v763_v41, 0.0 }
 0x361   :  { %1019 = vmatmul.f32.gmra.mxu3 %v1376_v51  ;;  %v767_v51 = vpop.f32.mrf.mxu1 }
 0x369   :  { %1022 = vmatmul.f32.gmra.mxu3 %v1379_v39 }
 0x371   :  { %1025 = vmatmul.f32.gmra.mxu3 %v1380_v42  ;;  %v766_v42 = vadd.f32 %v765_v26, %v717_v53 }
 0x373   :  { %v802_v35 = vmax.f32 %v766_v42, 0.0 }
 0x379   :  { %1028 = vmatmul.f32.gmra.mxu3 %v1383_v50  ;;  %v770_v50 = vpop.f32.mrf.mxu1 }
 0x37a   :  { %v771_v34 = vadd.f32 %v770_v50, %v722_v57 }
 0x381   :  { %1031 = vmatmul.f32.gmra.mxu3 %v1384_v55  ;;  %v768_v55 = vadd.f32 %v767_v51, %v719_v40 }
 0x383   :  { %v804_v36 = vmax.f32 %v768_v55, 0.0 }
 0x38c   :  { %v987_v60 = vpop.f32.mrf.mxu3 }
 0x38d   :  { %v988_v61 = vadd.f32 %v987_v60, %v786_v59  ;;  %v772_v59 = vpop.f32.mrf.mxu1  ;;  %v726_v60 = vpop.f32.mrf.mxu0 }
 0x38e   :  { %v773_v43 = vadd.f32 %v772_v59, %v724_v29 }
 0x38f   :  { %1035 = vst [vmem:[#allocation13] sm:$0xff] %v988_v61  ;;  %v806_v61 = vmax.f32 %v771_v34, 0.0 }
 0x394   :  { %v990_v62 = vpop.f32.mrf.mxu3 }
 0x395   :  { %v991_v30 = vadd.f32 %v990_v62, %v788_v46  ;;  %v775_v45 = vpop.f32.mrf.mxu1  ;;  %v808_v62 = vmax.f32 %v773_v43, 0.0  ;;  %v728_v63 = vpop.f32.mrf.mxu0 }
 0x396   :  { %v729_v5 = vadd.f32 %v728_v63, %v1747_v32 }
 0x397   :  { %1036 = vst [vmem:[#allocation13 + $0x8] sm:$0xff] %v991_v30  ;;  %v727_v30 = vadd.f32 %v726_v60, %v1747_v32 }
 0x399   :  { %v776_v2 = vadd.f32 %v775_v45, %v727_v30 }
 0x39c   :  { %v993_v3 = vpop.f32.mrf.mxu3 }
 0x39d   :  { %v994_v4 = vadd.f32 %v993_v3, %v790_v1  ;;  %v777_v3 = vpop.f32.mrf.mxu1  ;;  %v731_v8 = vpop.f32.mrf.mxu0 }
 0x39e   :  { %v778_v9 = vadd.f32 %v777_v3, %v729_v5 }
 0x39f   :  { %1037 = vst [vmem:[#allocation13 + $0x10] sm:$0xff] %v994_v4  ;;  %v810_v4 = vmax.f32 %v776_v2, 0.0 }
 0x3a4   :  { %v996_v10 = vpop.f32.mrf.mxu3 }
 0x3a5   :  { %v997_v11 = vadd.f32 %v996_v10, %v792_v7  ;;  %v812_v10 = vmax.f32 %v778_v9, 0.0  ;;  %v780_v12 = vpop.f32.mrf.mxu1 }
 0x3a7   :  { %1038 = vst [vmem:[#allocation13 + $0x18] sm:$0xff] %v997_v11  ;;  %v732_v11 = vadd.f32 %v731_v8, %v1747_v32 }
 0x3a9   :  { %v781_v15 = vadd.f32 %v780_v12, %v732_v11 }
 0x3ac   :  { %v999_v16 = vpop.f32.mrf.mxu3 }
 0x3ad   :  { %v1000_v17 = vadd.f32 %v999_v16, %v794_v14  ;;  %v733_v16 = vpop.f32.mrf.mxu0 }
 0x3ae   :  { %v734_v18 = vadd.f32 %v733_v16, %v1747_v32 }
 0x3af   :  { %1039 = vst [vmem:[#allocation13 + $0x20] sm:$0xff] %v1000_v17  ;;  %v814_v17 = vmax.f32 %v781_v15, 0.0 }
 0x3b4   :  { %v1002_v23 = vpop.f32.mrf.mxu3 }
 0x3b5   :  { %v1003_v24 = vadd.f32 %v1002_v23, %v796_v21  ;;  %v782_v21 = vpop.f32.mrf.mxu1 }
 0x3b6   :  { %v783_v22 = vadd.f32 %v782_v21, %v734_v18 }
 0x3b7   :  { %1040 = vst [vmem:[#allocation13 + $0x28] sm:$0xff] %v1003_v24 }
 0x3b8   :  { %v816_v23 = vmax.f32 %v783_v22, 0.0 }
 0x3bc   :  { %v1005_v48 = vpop.f32.mrf.mxu3 }
 0x3bd   :  { %v1006_v49 = vadd.f32 %v1005_v48, %v798_v27 }
 0x3bf   :  { %1041 = vst [vmem:[#allocation13 + $0x30] sm:$0xff] %v1006_v49 }
 0x3c4   :  { %v1008_v39 = vpop.f32.mrf.mxu3 }
 0x3c5   :  { %v1009_v54 = vadd.f32 %v1008_v39, %v800_v52 }
 0x3c7   :  { %1042 = vst [vmem:[#allocation13 + $0x38] sm:$0xff] %v1009_v54 }
 0x3cc   :  { %v1011_v33 = vpop.f32.mrf.mxu3 }
 0x3cd   :  { %v1012_v38 = vadd.f32 %v1011_v33, %v802_v35 }
 0x3cf   :  { %1043 = vst [vmem:[#allocation13 + $0x40] sm:$0xff] %v1012_v38 }
 0x3d4   :  { %v1014_v58 = vpop.f32.mrf.mxu3 }
 0x3d5   :  { %v1015_v31 = vadd.f32 %v1014_v58, %v804_v36 }
 0x3d7   :  { %1044 = vst [vmem:[#allocation13 + $0x48] sm:$0xff] %v1015_v31 }
 0x3dc   :  { %v1017_v44 = vpop.f32.mrf.mxu3 }
 0x3dd   :  { %v1018_v46 = vadd.f32 %v1017_v44, %v806_v61 }
 0x3df   :  { %1045 = vst [vmem:[#allocation13 + $0x50] sm:$0xff] %v1018_v46 }
 0x3e4   :  { %v1020_v0 = vpop.f32.mrf.mxu3 }
 0x3e5   :  { %v1021_v1 = vadd.f32 %v1020_v0, %v808_v62 }
 0x3e7   :  { %1046 = vst [vmem:[#allocation13 + $0x58] sm:$0xff] %v1021_v1 }
 0x3ec   :  { %v1023_v6 = vpop.f32.mrf.mxu3 }
 0x3ed   :  { %v1024_v7 = vadd.f32 %v1023_v6, %v810_v4 }
 0x3ef   :  { %1047 = vst [vmem:[#allocation13 + $0x60] sm:$0xff] %v1024_v7 }
 0x3f4   :  { %v1026_v13 = vpop.f32.mrf.mxu3 }
 0x3f5   :  { %v1027_v14 = vadd.f32 %v1026_v13, %v812_v10 }
 0x3f7   :  { %1048 = vst [vmem:[#allocation13 + $0x68] sm:$0xff] %v1027_v14 }
 0x3fc   :  { %v1029_v19 = vpop.f32.mrf.mxu3 }
 0x3fd   :  { %v1030_v20 = vadd.f32 %v1029_v19, %v814_v17 }
 0x3ff   :  { %1049 = vst [vmem:[#allocation13 + $0x70] sm:$0xff] %v1030_v20 }
 0x404   :  { %v1032_v24 = vpop.f32.mrf.mxu3 }
 0x405   :  { %v1033_v25 = vadd.f32 %v1032_v24, %v816_v23 }
 0x407   :  { %1050 = vst [vmem:[#allocation13 + $0x78] sm:$0xff] %v1033_v25 }
 0x408   :  { %1063 = dma.vmem_to_hbm [thread:$0]  %s1056_s8, 2048, %s1058_s13, [#allocation4], %s1582_s9, %s1582_s9, %s1583_s10  }
 0x409   :  { %1579 = dma.done.wait [#allocation4], 2048  }
 0x40a   :  { %1580 = vsyncadd [#allocation4], 4294965248 }
 0x40b   :  { %1068 = vsyncpa [#allocation3], 1 }
 0x40c   :  { %1069 = vsyncpa [#allocation6], 1 }
 0x40d   :  { %1070 = vsyncpa [#allocation9], 1 }
 0x40e   :  { %1071 = vsyncpa [#allocation12], 1 }
 0x40f   :  { %1072 = vsyncpa [#allocation4], 1 }

</bundles_post_ra>
